<compile_context>
chip_gen: v6e
topology: v6e:2x2x1
jax: 0.10.0
libtpu: 0.0.40
codegen_flags: <defaults>
</compile_context>

<pallas_src>
import functools

import jax
import jax.numpy as jnp
import numpy as np
from jax.experimental import pallas as pl
from jax.experimental.pallas import tpu as pltpu

EPS = 1e-5
TP_MAX = 512 * 1024      # max pixel tile (lanes); the VMEM budget usually binds first
PIX_SPLITS = 2           # parallel split of the pixel axis (v7x has 2 TensorCores)


def _round_up(x, m):
    return -(-x // m) * m


def _vmem_budget():
    """Generation-aware VMEM budget (v5e/v6e: 128 MiB, v7x: 64 MiB per core)."""
    cap = 64 * 1024 * 1024
    try:
        info = pltpu.get_tpu_info()
        cap = int(getattr(info, "vmem_capacity_bytes", cap) or cap)
    except Exception:
        pass  # conservative fallback works on every generation
    budget = min(int(cap * 0.65), 96 * 1024 * 1024)   # double-buffered input blocks
    limit = min(int(cap * 0.90), 120 * 1024 * 1024)   # scoped vmem limit for Mosaic
    return budget, limit


def _pick_tile(C, HW, pred_itemsize, vmem_budget):
    """Largest pixel tile (multiple of 128 lanes) fitting the VMEM budget.

    Accounts for sublane padding: a (C, TP) block pads C up to the dtype's
    packing (8 rows for 32-bit, 16 for 16-bit, 32 for 8-bit) and the (1, TP)
    target block always occupies 8 x 32-bit rows of VMEM (32 B per lane).
    Both inputs are double-buffered by the pipeline.
    """
    if HW < 128:
        return HW  # single full-extent block
    pack = max(1, 4 // pred_itemsize)
    pred_sub = _round_up(C, 8 * pack)
    per_lane = 2 * pred_sub * pred_itemsize + 2 * 32
    tp_budget = max(128, (vmem_budget // per_lane) // 128 * 128)
    return int(min(TP_MAX, tp_budget, (HW // 128) * 128))


def _gdl_partial_kernel(pred_ref, tgt_ref, out_ref, *, tp, hw, tps, needs_mask):
    """grid = (N, S, tiles_per_split); out block (3, C, 1) is the accumulator."""
    s = pl.program_id(1)
    t = pl.program_id(2)

    @pl.when(t == 0)
    def _():
        out_ref[...] = jnp.zeros_like(out_ref)

    pred = pred_ref[...]                                   # (C, TP) native dtype
    if pred.dtype != jnp.float32:
        pred = pred.astype(jnp.float32)
    tgt = tgt_ref[...]                                     # (1, TP) native int
    if tgt.dtype != jnp.int32:
        tgt = tgt.astype(jnp.int32)

    ch = jax.lax.broadcasted_iota(jnp.int32, pred.shape, 0)
    onehot = tgt == ch                                     # (C, TP) bool, on the fly

    if needs_mask:
        # mask the ragged tail / overflow blocks against the global pixel index
        jj = s * tps + t
        lane = jax.lax.broadcasted_iota(jnp.int32, tgt.shape, 1)   # (1, TP)
        valid = (jj * tp + lane) < hw
        onehot = jnp.logical_and(onehot, valid)
        pred = jnp.where(valid, pred, 0.0)

    # per-step lane reduction into the tiny resident output block
    out_ref[0] += jnp.sum(onehot.astype(jnp.float32), axis=1, keepdims=True)   # sum(y)
    out_ref[1] += jnp.sum(jnp.where(onehot, pred, 0.0), axis=1, keepdims=True)  # sum(p*y)
    out_ref[2] += jnp.sum(pred, axis=1, keepdims=True)                          # sum(p)


@functools.partial(jax.jit, static_argnames=("tile_pixels",))
def generalized_dice_loss(pred, target, tile_pixels=None):
    """pred: (N, C, H, W) float probabilities; target: (N, H, W) integer labels."""
    N, C, H, W = pred.shape
    HW = H * W

    # free, contiguous reshapes; no transpose, no padding, no dtype widening
    if pred.dtype.itemsize > 4:
        pred = pred.astype(jnp.float32)
    pred3 = pred.reshape(N, C, HW)
    if jnp.issubdtype(target.dtype, jnp.integer) and target.dtype.itemsize <= 4:
        tgt3 = target.reshape(N, 1, HW)                    # native dtype pass-through
    else:
        tgt3 = target.reshape(N, 1, HW).astype(jnp.int32)

    budget, vmem_limit = _vmem_budget()
    if tile_pixels is None:
        TP = _pick_tile(C, HW, pred.dtype.itemsize, budget)
    else:
        TP = int(tile_pixels)                              # test hook
    assert TP == HW or (TP % 128 == 0 and TP <= HW)

    tiles = -(-HW // TP)
    S = PIX_SPLITS if tiles >= PIX_SPLITS else 1
    tps = -(-tiles // S)
    needs_clamp = S * tps > tiles                          # overflow blocks exist
    needs_mask = (HW % TP != 0) or needs_clamp

    if needs_clamp:
        last = tiles - 1
        pix_idx = lambda n, s, t: (n, 0, jnp.minimum(s * tps + t, last))
    else:
        pix_idx = lambda n, s, t: (n, 0, s * tps + t)

    kernel = functools.partial(_gdl_partial_kernel, tp=TP, hw=HW, tps=tps,
                               needs_mask=needs_mask)

    partial_sums = pl.pallas_call(
        kernel,
        out_shape=jax.ShapeDtypeStruct((N, S, 3, C, 1), jnp.float32),
        grid_spec=pltpu.PrefetchScalarGridSpec(
            num_scalar_prefetch=0,
            grid=(N, S, tps),
            in_specs=[
                pl.BlockSpec((None, C, TP), pix_idx),
                pl.BlockSpec((None, 1, TP), pix_idx),
            ],
            out_specs=pl.BlockSpec((None, None, 3, C, 1),
                                   lambda n, s, t: (n, s, 0, 0, 0)),
        ),
        compiler_params=pltpu.CompilerParams(
            dimension_semantics=("parallel", "parallel", "arbitrary"),
            vmem_limit_bytes=vmem_limit),
    )(pred3, tgt3)

    # tiny per-channel combine in plain JAX (C-sized vectors)
    sy = jnp.sum(partial_sums[:, :, 0, :, 0], axis=(0, 1))    # sum(y_onehot)
    spy = jnp.sum(partial_sums[:, :, 1, :, 0], axis=(0, 1))   # sum(pred * y)
    sp = jnp.sum(partial_sums[:, :, 2, :, 0], axis=(0, 1))    # sum(pred)
    wei = 1.0 / (sy * sy + EPS)
    intersection = jnp.sum(wei * spy)
    union = jnp.sum(wei * (sp + sy))                           # sum(pred+y)
    return 1.0 - 2.0 * intersection / (union + EPS)


def _reference(pred, target):
    # pure-JAX reference mirroring the PyTorch module
    C = pred.shape[1]
    y = jax.nn.one_hot(target, C, axis=1, dtype=jnp.float32)      # (N,C,H,W)
    wei = 1.0 / (jnp.sum(y, axis=(0, 2, 3)) ** 2 + EPS)
    intersection = jnp.sum(wei * jnp.sum(pred * y, axis=(0, 2, 3)))
    union = jnp.sum(wei * jnp.sum(pred + y, axis=(0, 2, 3)))
    return 1.0 - 2.0 * intersection / (union + EPS)


def _run_case(key, N, C, H, W, tile_pixels=None):
    k1, k2 = jax.random.split(key)
    logits = jax.random.normal(k1, (N, C, H, W), dtype=jnp.float32)
    pred = jax.nn.softmax(logits, axis=1)                     # NCHW probabilities
    target = jax.random.randint(k2, (N, H, W), 0, C, dtype=jnp.int32)
    loss = jax.block_until_ready(
        generalized_dice_loss(pred, target, tile_pixels=tile_pixels))
    ref = jax.block_until_ready(_reference(pred, target))
    np.testing.assert_allclose(np.asarray(loss), np.asarray(ref),
                               rtol=1e-5, atol=1e-6)


if __name__ == "__main__":
    key = jax.random.PRNGKey(0)
    k1, k2, k3 = jax.random.split(key, 3)
    # auto-tiled path (HW multiple of 128, single tile per sample)
    _run_case(k1, N=2, C=4, H=16, W=16)
    # forced small tile: ragged tail tile -> in-kernel masking path
    _run_case(k2, N=1, C=4, H=13, W=13, tile_pixels=128)
    # odd tile count -> pixel-axis split with clamped + masked overflow block
    _run_case(k3, N=2, C=4, H=16, W=20, tile_pixels=128)
    print("KERNEL_OK")
</pallas_src>

<mosaic_0001>
module attributes {stable_mosaic.version = 11 : i64} {
  func.func @_gdl_partial_kernel(%arg0: i32, %arg1: i32, %arg2: i32, %arg3: memref<1x4x256xf32, #tpu.memory_space<vmem>>, %arg4: memref<1x1x256xi32, #tpu.memory_space<vmem>>, %arg5: memref<1x1x3x4x1xf32, #tpu.memory_space<vmem>>) attributes {dimension_semantics = [#tpu.dimension_semantics<parallel>, #tpu.dimension_semantics<parallel>, #tpu.dimension_semantics<arbitrary>], iteration_bounds = array<i64: 2, 1, 1>, scalar_prefetch = 0 : i64, scratch_operands = 0 : i64, tpu.core_type = #tpu.core_type<tc>, window_params = [{transform_indices = @transform_0, window_bounds = array<i64: 1, 4, 256>}, {transform_indices = @transform_1, window_bounds = array<i64: 1, 1, 256>}, {transform_indices = @transform_2, window_bounds = array<i64: 1, 1, 3, 4, 1>}]} {
    %c0_i32 = arith.constant 0 : i32
    %0 = arith.cmpi eq, %arg2, %c0_i32 : i32
    %1 = arith.extui %0 : i1 to i32
    %c0_i32_0 = arith.constant 0 : i32
    %2 = arith.cmpi ne, %1, %c0_i32_0 : i32
    scf.if %2 {
      %cst_37 = arith.constant 0.000000e+00 : f32
      %38 = vector.broadcast %cst_37 : f32 to vector<3x4x1xf32>
      %c0_38 = arith.constant 0 : index
      %c0_39 = arith.constant 0 : index
      %c0_40 = arith.constant 0 : index
      %c0_41 = arith.constant 0 : index
      %c0_42 = arith.constant 0 : index
      %39 = vector.load %arg5[%c0_38, %c0_39, %c0_40, %c0_41, %c0_42] : memref<1x1x3x4x1xf32, #tpu.memory_space<vmem>>, vector<1x1x3x4x1xf32>
      %40 = vector.shape_cast %39 : vector<1x1x3x4x1xf32> to vector<3x4x1xf32>
      %41 = vector.shape_cast %38 : vector<3x4x1xf32> to vector<1x1x3x4x1xf32>
      tpu.vector_store %arg5[%c0_38, %c0_39, %c0_40, %c0_41, %c0_42], %41 {strides = array<i32>} : memref<1x1x3x4x1xf32, #tpu.memory_space<vmem>>, vector<1x1x3x4x1xf32>,
    } else {
    }
    %c0 = arith.constant 0 : index
    %c0_1 = arith.constant 0 : index
    %c0_2 = arith.constant 0 : index
    %3 = vector.load %arg3[%c0, %c0_1, %c0_2] : memref<1x4x256xf32, #tpu.memory_space<vmem>>, vector<1x4x256xf32>
    %4 = vector.shape_cast %3 : vector<1x4x256xf32> to vector<4x256xf32>
    %c0_3 = arith.constant 0 : index
    %c0_4 = arith.constant 0 : index
    %c0_5 = arith.constant 0 : index
    %5 = vector.load %arg4[%c0_3, %c0_4, %c0_5] : memref<1x1x256xi32, #tpu.memory_space<vmem>>, vector<1x1x256xi32>
    %6 = vector.shape_cast %5 : vector<1x1x256xi32> to vector<1x256xi32>
    %7 = tpu.iota {dimensions = array<i32: 0>} : vector<4x256xi32>
    %8 = vector.broadcast %6 : vector<1x256xi32> to vector<4x256xi32>
    %9 = arith.cmpi eq, %8, %7 : vector<4x256xi32>
    %c0_6 = arith.constant 0 : index
    %c0_7 = arith.constant 0 : index
    %c0_8 = arith.constant 0 : index
    %c0_9 = arith.constant 0 : index
    %c0_10 = arith.constant 0 : index
    %10 = vector.load %arg5[%c0_6, %c0_7, %c0_8, %c0_9, %c0_10] : memref<1x1x3x4x1xf32, #tpu.memory_space<vmem>>, vector<1x1x1x4x1xf32>
    %11 = vector.shape_cast %10 : vector<1x1x1x4x1xf32> to vector<4x1xf32>
    %12 = arith.extui %9 : vector<4x256xi1> to vector<4x256xi32>
    %13 = arith.sitofp %12 : vector<4x256xi32> to vector<4x256xf32>
    %cst = arith.constant dense<0.000000e+00> : vector<4xf32>
    %14 = vector.multi_reduction <add>, %13, %cst [1] : vector<4x256xf32> to vector<4xf32>
    %15 = vector.shape_cast %14 : vector<4xf32> to vector<4x1xf32>
    %16 = arith.addf %11, %15 : vector<4x1xf32>
    %c0_11 = arith.constant 0 : index
    %c0_12 = arith.constant 0 : index
    %c0_13 = arith.constant 0 : index
    %c0_14 = arith.constant 0 : index
    %c0_15 = arith.constant 0 : index
    %17 = vector.load %arg5[%c0_11, %c0_12, %c0_13, %c0_14, %c0_15] : memref<1x1x3x4x1xf32, #tpu.memory_space<vmem>>, vector<1x1x1x4x1xf32>
    %18 = vector.shape_cast %17 : vector<1x1x1x4x1xf32> to vector<4x1xf32>
    %19 = vector.shape_cast %16 : vector<4x1xf32> to vector<1x1x1x4x1xf32>
    tpu.vector_store %arg5[%c0_11, %c0_12, %c0_13, %c0_14, %c0_15], %19 {strides = array<i32>} : memref<1x1x3x4x1xf32, #tpu.memory_space<vmem>>, vector<1x1x1x4x1xf32>,
    %c0_16 = arith.constant 0 : index
    %c0_17 = arith.constant 0 : index
    %c1 = arith.constant 1 : index
    %c0_18 = arith.constant 0 : index
    %c0_19 = arith.constant 0 : index
    %20 = vector.load %arg5[%c0_16, %c0_17, %c1, %c0_18, %c0_19] : memref<1x1x3x4x1xf32, #tpu.memory_space<vmem>>, vector<1x1x1x4x1xf32>
    %21 = vector.shape_cast %20 : vector<1x1x1x4x1xf32> to vector<4x1xf32>
    %cst_20 = arith.constant 0.000000e+00 : f32
    %22 = vector.broadcast %cst_20 : f32 to vector<4x256xf32>
    %23 = arith.select %9, %4, %22 : vector<4x256xi1>, vector<4x256xf32>
    %cst_21 = arith.constant dense<0.000000e+00> : vector<4xf32>
    %24 = vector.multi_reduction <add>, %23, %cst_21 [1] : vector<4x256xf32> to vector<4xf32>
    %25 = vector.shape_cast %24 : vector<4xf32> to vector<4x1xf32>
    %26 = arith.addf %21, %25 : vector<4x1xf32>
    %c0_22 = arith.constant 0 : index
    %c0_23 = arith.constant 0 : index
    %c1_24 = arith.constant 1 : index
    %c0_25 = arith.constant 0 : index
    %c0_26 = arith.constant 0 : index
    %27 = vector.load %arg5[%c0_22, %c0_23, %c1_24, %c0_25, %c0_26] : memref<1x1x3x4x1xf32, #tpu.memory_space<vmem>>, vector<1x1x1x4x1xf32>
    %28 = vector.shape_cast %27 : vector<1x1x1x4x1xf32> to vector<4x1xf32>
    %29 = vector.shape_cast %26 : vector<4x1xf32> to vector<1x1x1x4x1xf32>
    tpu.vector_store %arg5[%c0_22, %c0_23, %c1_24, %c0_25, %c0_26], %29 {strides = array<i32>} : memref<1x1x3x4x1xf32, #tpu.memory_space<vmem>>, vector<1x1x1x4x1xf32>,
    %c0_27 = arith.constant 0 : index
    %c0_28 = arith.constant 0 : index
    %c2 = arith.constant 2 : index
    %c0_29 = arith.constant 0 : index
    %c0_30 = arith.constant 0 : index
    %30 = vector.load %arg5[%c0_27, %c0_28, %c2, %c0_29, %c0_30] : memref<1x1x3x4x1xf32, #tpu.memory_space<vmem>>, vector<1x1x1x4x1xf32>
    %31 = vector.shape_cast %30 : vector<1x1x1x4x1xf32> to vector<4x1xf32>
    %cst_31 = arith.constant dense<0.000000e+00> : vector<4xf32>
    %32 = vector.multi_reduction <add>, %4, %cst_31 [1] : vector<4x256xf32> to vector<4xf32>
    %33 = vector.shape_cast %32 : vector<4xf32> to vector<4x1xf32>
    %34 = arith.addf %31, %33 : vector<4x1xf32>
    %c0_32 = arith.constant 0 : index
    %c0_33 = arith.constant 0 : index
    %c2_34 = arith.constant 2 : index
    %c0_35 = arith.constant 0 : index
    %c0_36 = arith.constant 0 : index
    %35 = vector.load %arg5[%c0_32, %c0_33, %c2_34, %c0_35, %c0_36] : memref<1x1x3x4x1xf32, #tpu.memory_space<vmem>>, vector<1x1x1x4x1xf32>
    %36 = vector.shape_cast %35 : vector<1x1x1x4x1xf32> to vector<4x1xf32>
    %37 = vector.shape_cast %34 : vector<4x1xf32> to vector<1x1x1x4x1xf32>
    tpu.vector_store %arg5[%c0_32, %c0_33, %c2_34, %c0_35, %c0_36], %37 {strides = array<i32>} : memref<1x1x3x4x1xf32, #tpu.memory_space<vmem>>, vector<1x1x1x4x1xf32>,
    return
  }
  func.func @transform_0(%arg0: i32, %arg1: i32, %arg2: i32) -> (i32, i32, i32) {
    %c1_i32 = arith.constant 1 : i32
    %0 = arith.muli %arg1, %c1_i32 : i32
    %1 = arith.addi %0, %arg2 : i32
    %c0_i32 = arith.constant 0 : i32
    %c0_i32_0 = arith.constant 0 : i32
    return %arg0, %c0_i32, %1 : i32, i32, i32
  }
  func.func @transform_1(%arg0: i32, %arg1: i32, %arg2: i32) -> (i32, i32, i32) {
    %c1_i32 = arith.constant 1 : i32
    %0 = arith.muli %arg1, %c1_i32 : i32
    %1 = arith.addi %0, %arg2 : i32
    %c0_i32 = arith.constant 0 : i32
    %c0_i32_0 = arith.constant 0 : i32
    return %arg0, %c0_i32, %1 : i32, i32, i32
  }
  func.func @transform_2(%arg0: i32, %arg1: i32, %arg2: i32) -> (i32, i32, i32, i32, i32) {
    %c0_i32 = arith.constant 0 : i32
    %c0_i32_0 = arith.constant 0 : i32
    %c0_i32_1 = arith.constant 0 : i32
    %c0_i32_2 = arith.constant 0 : i32
    return %arg0, %arg1, %c0_i32, %c0_i32_0, %c0_i32_1 : i32, i32, i32, i32, i32
  }
}

</mosaic_0001>

<bundles_post_ra>
// kernel: generalized_dice_loss.1
= control target key start
LH: loop header
LB: loop body
LE: loop exit
PB: predicated region body
PF: predicated region fallthrough
CT: control target
= control target key end

     0   :  { %s487_s9 = smov 0   ;;  %s489_s10 = smov 0   ;;  %s546_s0 = inlined_call_operand.vmem [shape: f32[2,4,256], index: 0, kind: input, shape index: {}]   ;;  %s547_s1 = inlined_call_operand.vmem [shape: s32[2,1,256], index: 1, kind: input, shape index: {}]   ;;  %s548_s2 = inlined_call_operand.vmem [shape: f32[2,1,3,4,1], index: 2, kind: output, shape index: {}]  }
   0x1   :  { %s491_s11 = smov 0  }
   0x2 LB: > { %s31_s12 = sadd.s32 1, %s465_s10  ;;  %p406_p0 = scmp.ge.s32.totalorder %s469_s11, 1  ;;  %s469_s11 = sphi %s491_s11, %s12_s11   ;;  %s465_s10 = sphi %s489_s10, %s550_s10   ;;  %s461_s9 = sphi %s487_s9, %s549_s9  }
   0x3   : > { %p33_p1 = scmp.ge.s32.totalorder %s31_s12, 2  ;;  %p164_p2 = scmp.lt.s32.totalorder %s469_s11, 3 }
   0x5   : > { %s552_s12 = smov (%p33_p1, %s31_s12), 0  ;;  %p165_p3 = pnand %p406_p0, %p164_p2 }
   0x6   : > { %p206_p4 = scmp.lt.s32.totalorder (!%p165_p3), %s461_s9, 1 }
   0x7   : > { %168 = sbr.rel (%p165_p3) target bundleno = 170 (0xaa), region = 28 }
   0xc   : > { %v246_v0 = vlaneseq  ;;  %s554_s9 = smov (!%p206_p4, %s461_s9), 1  ;;  %vm240_vm0 = vcmask 3072   ;;  %vm263_vm1 = vcmask 1043456   ;;  %v471_v8 = vmov 0.0  }
   0xd   : > { %s409_s13 = sshll.u32 %s554_s9, 1  ;;  %s420_s14 = smul.u32 12, %s554_s9 }
   0xe   : > { %v247_v1 = vshrl.u32 %v246_v0, 7  ;;  %s224_s17 = scalar_lea.vmem %s547_s1, %s409_s13  ;;  %s419_s18 = sshll.u32 %s554_s9, 3 }
   0xf   : > { %s511_s21 = scalar_lea.vmem %s548_s2, %s420_s14  ;;  %v245_v4 = vld [vmem:[%s224_s17] sm:$0x3]  ;;  %s213_s24 = scalar_lea.vmem %s546_s0, %s419_s18 }
  0x10   : > { %v250_v2 = vsub.s32 0, %v247_v1  ;;  %v254_v3 = vsub.s32 1, %v247_v1  ;;  %v244_v7 = vld [vmem:[%s213_s24] sm:$0xff]  ;;  %241 = vst.msk [vmem:[%s511_s21] sm:$0xf] %vm240_vm0, %v471_v8 }
  0x11   : > { %242 = vst.msk [vmem:[%s511_s21 + $0x4] sm:$0xf] %vm240_vm0, %v471_v8  ;;  %243 = vst.msk [vmem:[%s511_s21 + $0x8] sm:$0xf] %vm240_vm0, %v471_v8  ;;  %v275_v9 = vcombine.high %v244_v7, %v244_v7  ;;  %v288_v10 = vsel %vm263_vm1, %v244_v7, 0.0 }
  0x12   : > { %v251_v5 = vrot.slane %v245_v4, %v250_v2  ;;  %v255_v6 = vrot.slane %v245_v4, %v254_v3 }
  0x13   : > { %v289_v13 = vsel %vm263_vm1, %v275_v9, 0.0 }
  0x14   : > { %vm256_vm2 = vcmp.eq.s32.totalorder %v251_v5, %v247_v1  ;;  %vm257_vm3 = vcmp.eq.s32.totalorder %v255_v6, %v247_v1  ;;  %v290_v17 = vadd.f32 %v289_v13, %v288_v10 }
  0x15   : > { %v411_v11 = vsel %vm256_vm2, 1.0, %v471_v8  ;;  %v412_v12 = vsel %vm257_vm3, 1.0, %v471_v8  ;;  %v277_v14 = vsel %vm256_vm2, %v244_v7, 0.0  ;;  %v278_v18 = vsel %vm257_vm3, %v275_v9, 0.0 }
  0x16   : > { %v264_v15 = vsel %vm263_vm1, %v411_v11, 0.0  ;;  %v265_v16 = vsel %vm263_vm1, %v412_v12, 0.0  ;;  %v279_v20 = vsel %vm263_vm1, %v277_v14, 0.0  ;;  %v280_v21 = vsel %vm263_vm1, %v278_v18, 0.0  ;;  %291 = vadd.xlane.f32.xlu1 %v290_v17 }
  0x17   : > { %v266_v19 = vadd.f32 %v265_v16, %v264_v15  ;;  %v281_v22 = vadd.f32 %v280_v21, %v279_v20  ;;  %v258_v24 = vld [vmem:[%s511_s21] sm:$0xf] }
  0x18   : > { %v415_v23 = vld [vmem:[%s511_s21 + $0x8] sm:$0xf]  ;;  %v413_v29 = vld [vmem:[%s511_s21 + $0x4] sm:$0xf] }
  0x19   : > { %267 = vadd.xlane.f32.xlu0 %v266_v19 }
  0x1d   : > { %282 = vadd.xlane.f32.xlu0 %v281_v22 }
  0x9f   : > { %v292_v25 = vpop.xlane.xlu1 %291 }
  0xa0   : > { %v293_v27 = vadd.f32 %v415_v23, %v292_v25 }
  0xa2   : > { %v268_v26 = vpop.xlane.xlu0 %267  ;;  %416 = vst.msk [vmem:[%s511_s21 + $0x8] sm:$0xf] %vm240_vm0, %v293_v27 }
  0xa3   : > { %v269_v28 = vadd.f32 %v268_v26, %v258_v24 }
  0xa5   : > { %271 = vst.msk [vmem:[%s511_s21] sm:$0xf] %vm240_vm0, %v269_v28 }
  0xa6   : > { %v283_v30 = vpop.xlane.xlu0 %282 }
  0xa7   : > { %v284_v31 = vadd.f32 %v413_v29, %v283_v30 }
  0xa9   : > { %414 = vst.msk [vmem:[%s511_s21 + $0x4] sm:$0xf] %vm240_vm0, %v284_v31 }
  0xaa PF: > { %s12_s11 = sadd.s32 1, %s469_s11   ;;  %s549_s9 = smov %s465_s10 }
  0xab   : > { %p9_p5 = scmp.ge.s32.totalorder %s12_s11, 4   ;;  %s550_s10 = smov %s552_s12 }
  0xad   :  { %11 = sbr.rel (!%p9_p5) target bundleno = 2 (0x2), region = 67 }

</bundles_post_ra>
